<compile_context>
chip_gen: v7x
topology: tpu7x:2x2x1
jax: 0.10.0
libtpu: 0.0.40
codegen_flags: <defaults>
</compile_context>

<pallas_src>
import functools

import jax
import jax.numpy as jnp
from jax.experimental import pallas as pl
from jax.experimental.pallas import tpu as pltpu

LANE = 128
SUBLANE = 8
_MiB = 1024 * 1024


def _round_up(x, m):
    return ((x + m - 1) // m) * m


def _pad_axis(x, axis, target):
    pad = target - x.shape[axis]
    if pad == 0:
        return x
    widths = [(0, 0)] * x.ndim
    widths[axis] = (0, pad)
    return jnp.pad(x, widths)


def _largest_divisor(n, cap, step):
    """Largest multiple of `step` that divides n and is <= cap (n % step == 0)."""
    cap = max(step, min(cap, n))
    t = cap - (cap % step)
    while t > step:
        if n % t == 0:
            return t
        t -= step
    return step


def _select_tile_k(n_p, tile_n, f_out_p, itemsize, budget_bytes):
    """Largest multiple-of-128 divisor of n_p whose VMEM footprint fits budget."""
    fixed = 3 * tile_n * f_out_p * 4          # out block (x2) + f32 accumulator
    per_k = 2 * itemsize * (tile_n + f_out_p)  # double-buffered As + Y tiles
    max_k = max(LANE, (budget_bytes - fixed) // per_k)
    return _largest_divisor(n_p, min(max_k, n_p), LANE)


# ------------------------------- kernel -----------------------------------

def gt_layer_kernel(as_ref, y_ref, out_ref, acc_ref, *, apply_relu):
    # as_ref  : (1, tile_n, tile_k)   adjacency tile for edge type a
    # y_ref   : (1, tile_k, F_out_p)  Y[a] = H @ W_eff[a] tile
    # out_ref : (tile_n, F_out_p)     float32
    # acc_ref : (tile_n, F_out_p)     float32 scratch accumulator
    a = pl.program_id(1)
    k = pl.program_id(2)

    @pl.when((a == 0) & (k == 0))
    def _():
        acc_ref[...] = jnp.zeros_like(acc_ref)

    acc_ref[...] += jnp.dot(as_ref[0], y_ref[0],
                            preferred_element_type=jnp.float32)

    @pl.when((a == pl.num_programs(1) - 1) & (k == pl.num_programs(2) - 1))
    def _():
        res = acc_ref[...]
        if apply_relu:
            res = jnp.maximum(res, 0.0)
        out_ref[...] = res.astype(out_ref.dtype)


# ------------------------------- wrapper -----------------------------------

def gt_layer(As, H, weight, att_weight, *, apply_relu,
             matmul_dtype=jnp.bfloat16, tile_n=None, tile_k=None,
             vmem_budget_bytes=24 * _MiB):
    """One GTLayer.  As: (A,N,N), H: (N,F_in), weight: (C,F_in,F_out),
    att_weight: (C,F_in,A).  Returns (N, F_out) float32."""
    # TODO(synk): F.dropout is stochastic; implemented as identity (eval mode).
    A, N, _ = As.shape
    C, F_in, F_out = weight.shape
    hp = jax.lax.Precision.HIGHEST

    # Channel attention + channel mean folded into per-edge-type effective
    # projections, then Y[a] = H @ W_eff[a].  All tiny (O(A*N*F_in*F_out)),
    # done in plain JAX in f32; the O(A*N^2*F_out) part stays in the kernel.
    scores = jax.nn.softmax(
        jnp.mean(att_weight.astype(jnp.float32), axis=1), axis=-1)      # (C, A)
    w_eff = jnp.einsum('ca,cio->aio', scores, weight.astype(jnp.float32),
                       precision=hp) * (1.0 / C)                        # (A, F_in, F_out)
    y = jnp.einsum('ni,aio->ano', H.astype(jnp.float32), w_eff,
                   precision=hp)                                        # (A, N, F_out)

    # Exact zero padding: N -> mult of 128 (lane-dense As, full MXU K),
    # F_out -> mult of 128 (lane-dense stores).  Sliced off below.
    N_p = _round_up(N, LANE)
    F_out_p = _round_up(F_out, LANE)
    as_p = _pad_axis(_pad_axis(As.astype(matmul_dtype), 1, N_p), 2, N_p)
    y_p = _pad_axis(_pad_axis(y, 1, N_p), 2, F_out_p).astype(matmul_dtype)

    itemsize = jnp.dtype(matmul_dtype).itemsize
    if tile_n is None:
        # cap at N_p//2 so the parallel row axis has >= 2 steps (v7x megacore)
        tile_n = _largest_divisor(N_p, max(SUBLANE, min(256, N_p // 2)), SUBLANE)
    if tile_k is None:
        tile_k = _select_tile_k(N_p, tile_n, F_out_p, itemsize, vmem_budget_bytes)
    grid_n = N_p // tile_n
    grid_k = N_p // tile_k
    grid = (grid_n, A, grid_k)

    # Actual VMEM footprint -> vmem limit (headroom, capped for v7x's 64 MiB).
    vmem_bytes = (2 * tile_n * tile_k * itemsize      # As tile, double-buffered
                  + 2 * tile_k * F_out_p * itemsize   # Y tile, double-buffered
                  + 2 * tile_n * F_out_p * 4          # out tile
                  + tile_n * F_out_p * 4)             # accumulator scratch
    vmem_limit = max(min(vmem_bytes + 12 * _MiB, 40 * _MiB),
                     vmem_bytes + 2 * _MiB)

    cost = pl.CostEstimate(
        flops=2 * A * N_p * N_p * F_out_p,
        transcendentals=0,
        bytes_accessed=(as_p.size * itemsize             # As streamed once
                        + grid_n * y_p.size * itemsize   # Y re-read per row tile
                        + N_p * F_out_p * 4))

    kernel = functools.partial(gt_layer_kernel, apply_relu=apply_relu)

    out_p = pl.pallas_call(
        kernel,
        out_shape=jax.ShapeDtypeStruct((N_p, F_out_p), jnp.float32),
        grid=grid,
        in_specs=[
            pl.BlockSpec((1, tile_n, tile_k), lambda i, a, k: (a, i, k)),    # As
            pl.BlockSpec((1, tile_k, F_out_p), lambda i, a, k: (a, k, 0)),   # Y
        ],
        out_specs=pl.BlockSpec((tile_n, F_out_p), lambda i, a, k: (i, 0)),
        scratch_shapes=[pltpu.VMEM((tile_n, F_out_p), jnp.float32)],
        compiler_params=pltpu.CompilerParams(
            dimension_semantics=("parallel", "arbitrary", "arbitrary"),
            vmem_limit_bytes=int(vmem_limit)),
        cost_estimate=cost,
    )(as_p, y_p)

    return out_p[:N, :F_out]


def gtn_forward(As, X, params, *, matmul_dtype=jnp.bfloat16,
                tile_n=None, tile_k=None):
    """GTN.forward: stack of GTLayers with ReLU between layers, squeeze."""
    H = X
    num_layers = len(params)
    for i, (w, aw) in enumerate(params):
        H = gt_layer(As, H, w, aw, apply_relu=(i < num_layers - 1),
                     matmul_dtype=matmul_dtype, tile_n=tile_n, tile_k=tile_k)
    return jnp.squeeze(H)


# ----------------------- parameter initialization -------------------------

def xavier_uniform(key, shape):
    # mirrors torch.nn.init.xavier_uniform_ fan computation for >=2D tensors
    receptive = 1
    for d in shape[2:]:
        receptive *= d
    fan_in = shape[1] * receptive
    fan_out = shape[0] * receptive
    bound = (6.0 / (fan_in + fan_out)) ** 0.5
    return jax.random.uniform(key, shape, jnp.float32, -bound, bound)


def init_gtn_params(key, num_edge_types, num_channels, in_features,
                    hidden_features, out_features, num_layers):
    params = []
    in_dim = in_features
    for l in range(num_layers):
        out_dim = hidden_features if l < num_layers - 1 else out_features
        key, k1, k2 = jax.random.split(key, 3)
        w = xavier_uniform(k1, (num_channels, in_dim, out_dim))
        aw = xavier_uniform(k2, (num_channels, in_dim, num_edge_types))
        params.append((w, aw))
        in_dim = out_dim
    return params


# ----------------------------- pure-JAX reference -------------------------

def gtn_reference(As, X, params):
    hp = jax.lax.Precision.HIGHEST
    H = X
    num_layers = len(params)
    for i, (w, aw) in enumerate(params):
        outs = []
        for c in range(w.shape[0]):
            Hc = jnp.einsum('ni,io->no', H, w[c], precision=hp)
            score = jax.nn.softmax(jnp.mean(aw[c], axis=0))
            A_comb = jnp.einsum('a,anm->nm', score, As, precision=hp)
            outs.append(jnp.einsum('nm,mo->no', A_comb, Hc, precision=hp))
        H = jnp.mean(jnp.stack(outs, axis=0), axis=0)
        if i < num_layers - 1:
            H = jnp.maximum(H, 0.0)
    return jnp.squeeze(H)


if __name__ == "__main__":
    key = jax.random.PRNGKey(0)

    N = 64                 # number of graph nodes
    num_edge_types = 3     # |As|
    num_channels = 2
    in_features = 8
    hidden_features = 16
    out_features = 4
    num_layers = 2

    key, kx, ka, kp = jax.random.split(key, 4)
    X = jax.random.normal(kx, (N, in_features), jnp.float32)
    As = jax.random.bernoulli(ka, 0.3, (num_edge_types, N, N)).astype(
        jnp.float32)
    params = init_gtn_params(kp, num_edge_types, num_channels, in_features,
                             hidden_features, out_features, num_layers)

    ref = jax.block_until_ready(gtn_reference(As, X, params))

    # f32 matmul path, explicit small row tile (grid_n=4): strict check.
    out = jax.block_until_ready(
        gtn_forward(As, X, params, matmul_dtype=jnp.float32, tile_n=32))
    assert out.shape == ref.shape, (out.shape, ref.shape)
    max_err = float(jnp.max(jnp.abs(out - ref)))
    assert jnp.allclose(out, ref, atol=2e-4, rtol=2e-4), max_err

    # Default bf16 matmul inputs / f32 accumulation (HBM-bound fast path):
    # loose check (0/1 adjacency exact in bf16, Y quantized to bf16).
    out_bf16 = jax.block_until_ready(gtn_forward(As, X, params))
    max_err_bf16 = float(jnp.max(jnp.abs(out_bf16 - ref)))
    assert jnp.allclose(out_bf16, ref, atol=1e-1, rtol=1e-1), max_err_bf16

    print("KERNEL_OK")
</pallas_src>

<mosaic_0001>
module attributes {stable_mosaic.version = 11 : i64} {
  func.func @gt_layer_kernel(%arg0: i32, %arg1: i32, %arg2: i32, %arg3: memref<1x32x128xf32, #tpu.memory_space<vmem>>, %arg4: memref<1x128x128xf32, #tpu.memory_space<vmem>>, %arg5: memref<32x128xf32, #tpu.memory_space<vmem>>, %arg6: memref<32x128xf32, #tpu.memory_space<vmem>>) attributes {dimension_semantics = [#tpu.dimension_semantics<parallel>, #tpu.dimension_semantics<arbitrary>, #tpu.dimension_semantics<arbitrary>], iteration_bounds = array<i64: 4, 3, 1>, scalar_prefetch = 0 : i64, scratch_operands = 1 : i64, tpu.core_type = #tpu.core_type<tc>, window_params = [{transform_indices = @transform_0, window_bounds = array<i64: 1, 32, 128>}, {transform_indices = @transform_1, window_bounds = array<i64: 1, 128, 128>}, {transform_indices = @transform_2, window_bounds = array<i64: 32, 128>}]} {
    %c0_i32 = arith.constant 0 : i32
    %0 = arith.cmpi eq, %arg1, %c0_i32 : i32
    %c0_i32_0 = arith.constant 0 : i32
    %1 = arith.cmpi eq, %arg2, %c0_i32_0 : i32
    %2 = arith.andi %0, %1 : i1
    %3 = arith.extui %2 : i1 to i32
    %c0_i32_1 = arith.constant 0 : i32
    %4 = arith.cmpi ne, %3, %c0_i32_1 : i32
    scf.if %4 {
      %cst_13 = arith.constant 0.000000e+00 : f32
      %18 = vector.broadcast %cst_13 : f32 to vector<32x128xf32>
      %c0_14 = arith.constant 0 : index
      %c0_15 = arith.constant 0 : index
      %19 = vector.load %arg6[%c0_14, %c0_15] : memref<32x128xf32, #tpu.memory_space<vmem>>, vector<32x128xf32>
      tpu.vector_store %arg6[%c0_14, %c0_15], %18 {strides = array<i32>} : memref<32x128xf32, #tpu.memory_space<vmem>>, vector<32x128xf32>,
    } else {
    }
    %c0 = arith.constant 0 : index
    %c0_2 = arith.constant 0 : index
    %5 = vector.load %arg6[%c0, %c0_2] : memref<32x128xf32, #tpu.memory_space<vmem>>, vector<32x128xf32>
    %c0_3 = arith.constant 0 : index
    %c0_4 = arith.constant 0 : index
    %c0_5 = arith.constant 0 : index
    %6 = vector.load %arg3[%c0_3, %c0_4, %c0_5] : memref<1x32x128xf32, #tpu.memory_space<vmem>>, vector<1x32x128xf32>
    %7 = vector.shape_cast %6 : vector<1x32x128xf32> to vector<32x128xf32>
    %c0_6 = arith.constant 0 : index
    %c0_7 = arith.constant 0 : index
    %c0_8 = arith.constant 0 : index
    %8 = vector.load %arg4[%c0_6, %c0_7, %c0_8] : memref<1x128x128xf32, #tpu.memory_space<vmem>>, vector<1x128x128xf32>
    %9 = vector.shape_cast %8 : vector<1x128x128xf32> to vector<128x128xf32>
    %cst = arith.constant dense<0.000000e+00> : vector<32x128xf32>
    %10 = tpu.matmul %7, %9, %cst {dimension_numbers = #tpu.dot_dimension_numbers<[1], [0], [0], [1], [0, 0, 1, 1], [], []>} : vector<32x128xf32>, vector<128x128xf32>, vector<32x128xf32> -> vector<32x128xf32>
    %11 = arith.addf %5, %10 : vector<32x128xf32>
    %c0_9 = arith.constant 0 : index
    %c0_10 = arith.constant 0 : index
    %12 = vector.load %arg6[%c0_9, %c0_10] : memref<32x128xf32, #tpu.memory_space<vmem>>, vector<32x128xf32>
    tpu.vector_store %arg6[%c0_9, %c0_10], %11 {strides = array<i32>} : memref<32x128xf32, #tpu.memory_space<vmem>>, vector<32x128xf32>,
    %c2_i32 = arith.constant 2 : i32
    %13 = arith.cmpi eq, %arg1, %c2_i32 : i32
    %c0_i32_11 = arith.constant 0 : i32
    %14 = arith.cmpi eq, %arg2, %c0_i32_11 : i32
    %15 = arith.andi %13, %14 : i1
    %16 = arith.extui %15 : i1 to i32
    %c0_i32_12 = arith.constant 0 : i32
    %17 = arith.cmpi ne, %16, %c0_i32_12 : i32
    scf.if %17 {
      %c0_13 = arith.constant 0 : index
      %c0_14 = arith.constant 0 : index
      %18 = vector.load %arg6[%c0_13, %c0_14] : memref<32x128xf32, #tpu.memory_space<vmem>>, vector<32x128xf32>
      %cst_15 = arith.constant 0.000000e+00 : f32
      %19 = vector.broadcast %cst_15 : f32 to vector<32x128xf32>
      %20 = arith.maximumf %18, %19 : vector<32x128xf32>
      %c0_16 = arith.constant 0 : index
      %c0_17 = arith.constant 0 : index
      %21 = vector.load %arg5[%c0_16, %c0_17] : memref<32x128xf32, #tpu.memory_space<vmem>>, vector<32x128xf32>
      tpu.vector_store %arg5[%c0_16, %c0_17], %20 {strides = array<i32>} : memref<32x128xf32, #tpu.memory_space<vmem>>, vector<32x128xf32>,
    } else {
    }
    return
  }
  func.func @transform_0(%arg0: i32, %arg1: i32, %arg2: i32) -> (i32, i32, i32) {
    %c0_i32 = arith.constant 0 : i32
    return %arg1, %arg0, %arg2 : i32, i32, i32
  }
  func.func @transform_1(%arg0: i32, %arg1: i32, %arg2: i32) -> (i32, i32, i32) {
    %c0_i32 = arith.constant 0 : i32
    %c0_i32_0 = arith.constant 0 : i32
    return %arg1, %arg2, %c0_i32 : i32, i32, i32
  }
  func.func @transform_2(%arg0: i32, %arg1: i32, %arg2: i32) -> (i32, i32) {
    %c0_i32 = arith.constant 0 : i32
    %c0_i32_0 = arith.constant 0 : i32
    return %arg0, %c0_i32 : i32, i32
  }
}

</mosaic_0001>

<bundles_post_ra>
// kernel: tpu_custom_call.1
= control target key start
LH: loop header
LB: loop body
LE: loop exit
PB: predicated region body
PF: predicated region fallthrough
CT: control target
= control target key end

     0   :  { %s1396_s0 = inlined_call_operand.hbm [shape: f32[3,128,128], index: 0, kind: input, shape index: {}]   ;;  %s1397_s1 = inlined_call_operand.hbm [shape: f32[3,128,128], index: 1, kind: input, shape index: {}]   ;;  %s1398_s2 = inlined_call_operand.hbm [shape: f32[128,128], index: 2, kind: output, shape index: {}]  }
   0x1   :  { %1411 = sst [smem:[#allocation18_spill]] %s1398_s2 }
   0x2   :  { %7 = vsyncpa [#allocation4], 0 }
   0x3   :  { %9 = vsyncpa [#allocation4 + $0x1], 0 }
   0x4   :  { %10 = vsyncpa [#allocation7], 0 }
   0x5   :  { %12 = vsyncpa [#allocation7 + $0x1], 0 }
   0x6   :  { %13 = vsyncpa [#allocation5], 0 }
   0x7   :  { %15 = vsyncpa [#allocation5 + $0x1], 0  ;;  %s1013_s9 = smov 0   ;;  %s1015_s10 = smov 0  }
   0x8   :  { %s1017_s11 = smov 0   ;;  %s1019_s12 = smov 0  }
   0x9   :  { %s1021_s13 = smov 0   ;;  %s1023_s14 = smov 0  }
   0xa   :  { %s1025_s15 = smov 0   ;;  %s1027_s16 = smov 0  }
   0xb   :  { %s1029_s17 = smov 0   ;;  %s1031_s18 = smov 0  }
   0xc   :  { %s1033_s19 = smov 0   ;;  %s1035_s20 = smov 0  }
   0xd   :  { %s1037_s21 = smov 0   ;;  %s1039_s22 = smov 0  }
   0xe LB: > { %1412 = sst [smem:[#allocation12_spill]] %s936_s9  ;;  %s510_s23 = sadd.s32 4294967295, %s988_s22   ;;  %s988_s22 = sphi %s1039_s22, %s21_s22   ;;  %s984_s21 = sphi %s1037_s21, %s1457_s21   ;;  %s980_s20 = sphi %s1035_s20, %s1456_s20   ;;  %s976_s19 = sphi %s1033_s19, %s1455_s19   ;;  %s972_s18 = sphi %s1031_s18, %s1454_s18   ;;  %s968_s17 = sphi %s1029_s17, %s1453_s17   ;;  %s964_s16 = sphi %s1027_s16, %s1452_s16   ;;  %s960_s15 = sphi %s1025_s15, %s1451_s15   ;;  %s956_s14 = sphi %s1023_s14, %s1450_s14   ;;  %s952_s13 = sphi %s1021_s13, %s1449_s13   ;;  %s948_s12 = sphi %s1019_s12, %s1448_s12   ;;  %s944_s11 = sphi %s1017_s11, %s1441_s11   ;;  %s940_s10 = sphi %s1015_s10, %s1447_s10   ;;  %s936_s9 = sphi %s1013_s9, %s1446_s9  }
   0xf   : > { %1413 = sst [smem:[#allocation13_spill]] %s944_s11  ;;  %s511_s24 = sadd.s32 4294967294, %s988_s22  }
  0x10   : > { %s36_s25 = sadd.s32 1, %s980_s20  ;;  %s40_s26 = sadd.s32 1, %s984_s21 }
  0x11   : > { %p38_p0 = scmp.ge.s32.totalorder %s36_s25, 3  ;;  %s51_s27 = sadd.s32 1, %s968_s17 }
  0x12   : > { %p58_p1 = scmp.ne.s32.totalorder %s968_s17, %s964_s16  ;;  %p1405_p2 = scmp.eq.s32.totalorder %s988_s22, 0 }
  0x13   : > { %s1459_s25 = smov (%p38_p0, %s36_s25), 0  ;;  %s1461_s26 = smov (!%p38_p0, %s40_s26), %s984_s21 }
  0x14   : > { %1414 = sst [smem:[#allocation14_spill]] %s1459_s25  ;;  %s1094_s28 = ssub.s32 %s980_s20, %s1459_s25 }
  0x15   : > { %p1098_p3 = por %p1405_p2, %p58_p1  ;;  %p42_p4 = scmp.ge.s32.totalorder %s1461_s26, 4 }
  0x16   : > { %p64_p5 = scmp.ne.s32.totalorder %s964_s16, %s960_s15  ;;  %p1103_p6 = scmp.eq.s32.totalorder %s510_s23, 0 }
  0x17   : > { %s1463_s26 = smov (%p42_p4, %s1461_s26), 0  ;;  %s105_s4 = sadd.s32 1, %s944_s11 }
  0x18   : > { %1417 = sst [smem:[#allocation15_spill]] %s1463_s26  ;;  %p1112_p8 = por %p1103_p6, %p64_p5 }
  0x19   : > { %s45_s5 = ssub.s32 %s984_s21, %s1463_s26  ;;  %p115_p9 = scmp.ne.s32.totalorder %s944_s11, %s940_s10 }
  0x1a   : > { %s1418_s3 = scalar_select %p1112_p8, 1, 0 }
  0x1b   : > { %s46_s6 = sor.u32 %s45_s5, %s1094_s28  ;;  %p103_p10 = scmp.eq.s32.totalorder %s45_s5, 0 }
  0x1c   : > { %p49_p11 = scmp.eq.s32.totalorder %s46_s6, 0  ;;  %p116_p12 = scmp.eq.s32.totalorder %s510_s23, 11 }
  0x1d   : > { %s1123_s7 = scalar_select %p103_p10, %s944_s11, %s105_s4  }
  0x1e   : > { %s1126_s8 = scalar_select %p49_p11, %s968_s17, %s51_s27  }
  0x1f   : > { %1419 = sst [smem:[#allocation16_spill]] %s1123_s7  ;;  %p1128_p13 = por %p116_p12, %p115_p9 }
  0x20   : > { %1420 = sst [smem:[#allocation17_spill]] %s1126_s8  ;;  %p121_p0 = scmp.ne.s32.totalorder %s940_s10, %s936_s9 }
  0x21   : > { %s1421_s15 = scalar_select %p1128_p13, 1, 0 }
  0x22   : > { %p122_p1 = scmp.eq.s32.totalorder %s511_s24, 11  ;;  %p1404_p4 = scmp.lt.s32.totalorder %s988_s22, 12 }
  0x23   : > { %s142_s26 = sand.u32 1, %s968_s17   ;;  %s515_s4 = sshll.u32 %s984_s21, 2 }
  0x24   : > { %p1136_p5 = por %p122_p1, %p121_p0  ;;  %s514_s23 = sshll.u32 %s142_s26, 5 }
  0x25   : > { %s516_s5 = sshll.u32 %s980_s20, 4  ;;  %s146_s6 = scalar_lea.vmem [#allocation3], %s514_s23 }
  0x26   : > { %s1422_s25 = scalar_select %p1136_p5, 1, 0 }
  0x27   : > { %s153_s27 = sadd.s32 %s516_s5, %s515_s4  ;;  %s156_s8 = sshll.u32 %s146_s6, 4  ;;  %s1142_s8 = int_to_ptr.vmem [resolvable:$true] %s156_s8 }
  0x28   : > { %s517_s7 = sshll.u32 %s153_s27, 7  ;;  %p1153_p9 = pnand %p1404_p4, %p1098_p3 }
  0x29   : > { %s1147_s9 = scalar_lea.hbm %s1396_s0, %s517_s7  ;;  %s1158_s23 = scalar_lea.sflag [#allocation4], %s142_s26 }
  0x2a   : > { %s778_s4 = scalar_lea.hbm %s1147_s9, 512  ;;  %p780_p12 = pneg %p1153_p9 }
  0x2b   : > { %p779_p11 = scmp.ne.s32.totalorder %s1147_s9, %s778_s4  ;;  %s783_s29 = scalar_lea.hbm %s1396_s0, 6144 }
  0x2c   : > { %p784_p3 = scmp.lt.u32.totalorder %s1147_s9, %s1396_s0  ;;  %p785_p4 = scmp.lt.u32.totalorder %s783_s29, %s778_s4 }
  0x2d   : > { %p781_p0 = pnand %p780_p12, %p779_p11  ;;  %p787_p7 = scmp.lt.u32.totalorder %s778_s4, %s1147_s9 }
  0x2e   : > { %p786_p2 = por %p785_p4, %p784_p3 }
  0x2f   : > { %p782_p1 = pneg %p781_p0 }
  0x30   : > { %p788_p10 = por %p787_p7, %p786_p2 }
  0x32   : > { %p789_p5 = pnand %p788_p10, %p782_p1 }
  0x34   : > { %792 = shalt.err (!%p789_p5)
}
  0x35   : > { %s793_s26 = scalar_lea.vmem %s1142_s8, 512  ;;  %s990_s27 = smov [#allocation3]  }
  0x36   : > { %p794_p11 = scmp.ne.s32.totalorder %s1142_s8, %s793_s26  ;;  %s798_s6 = sshll.u32 %s990_s27, 4  ;;  %s799_s6 = int_to_ptr.vmem [resolvable:$false] %s798_s6 }
  0x37   : > { %s800_s2 = scalar_lea.vmem %s799_s6, 1024  ;;  %p801_p8 = scmp.lt.s32.totalorder %s1142_s8, %s799_s6 }
  0x38   : > { %p796_p0 = pnand %p794_p11, %p780_p12  ;;  %p802_p4 = scmp.lt.s32.totalorder %s800_s2, %s793_s26 }
  0x3a   : > { %p797_p13 = pneg %p796_p0  ;;  %p803_p3 = por %p802_p4, %p801_p8 }
  0x3c   : > { %p804_p2 = pnand %p803_p3, %p797_p13 }
  0x3e   : > { %807 = shalt.err (!%p804_p2)
}
  0x3f   : > { %s1408_s4 = smov 128   ;;  %s1409_s11 = smov 8  }
  0x40   : > { %651 = dma.hbm_to_vmem [thread:$0]  (!%p1153_p9), %s1147_s9, 512, %s1142_s8, %s1158_s23, %s1408_s4, %s1408_s4, %s1409_s11  }
  0x41   : > { %p187_p7 = scmp.lt.s32.totalorder %s988_s22, 13  ;;  %p1424_p8 = scmp.ge.s32.totalorder %s988_s22, 1 }
  0x42   : > { %s79_s7 = sadd.s32 1, %s956_s14  ;;  %p86_p5 = scmp.ne.s32.totalorder %s956_s14, %s952_s13 }
  0x43   : > { %p1192_p13 = pnand %p1424_p8, %p187_p7  ;;  %p1426_p10 = scmp.eq.s32.totalorder %s1094_s28, 0 }
  0x44   : > { %p1427_p12 = scmp.eq.s32.totalorder %s988_s22, 0  ;;  %p92_p11 = scmp.ne.s32.totalorder %s952_s13, %s948_s12 }
  0x45   : > { %s1202_s5 = scalar_select %p1426_p10, %s956_s14, %s79_s7  }
  0x46   : > { %p88_p1 = por %p86_p5, %p1427_p12  ;;  %s166_s26 = sand.u32 1, %s956_s14  }
  0x47   : > { %s532_s24 = sshll.u32 %s980_s20, 11  ;;  %p1212_p0 = por %p92_p11, %p1103_p6 }
  0x48   : > { %s518_s9 = sshll.u32 %s166_s26, 7  ;;  %s1219_s6 = scalar_lea.hbm %s1397_s1, %s532_s24 }
  0x49   : > { %s1428_s27 = scalar_select %p1212_p0, 1, 0 }
  0x4a   : > { %p1429_p9 = scmp.lt.s32.totalorder %s988_s22, 12  ;;  %s170_s28 = scalar_lea.vmem [#allocation6], %s518_s9 }
  0x4b   : > { %s179_s30 = sshll.u32 %s170_s28, 4  ;;  %s1229_s2 = scalar_lea.sflag [#allocation7], %s166_s26  ;;  %s1227_s30 = int_to_ptr.vmem [resolvable:$true] %s179_s30 }
  0x4c   : > { %p1223_p4 = pnand %p1429_p9, %p88_p1  ;;  %s808_s7 = scalar_lea.hbm %s1219_s6, 2048 }
  0x4d   : > { %p809_p6 = scmp.ne.s32.totalorder %s1219_s6, %s808_s7  ;;  %s813_s23 = scalar_lea.hbm %s1397_s1, 6144 }
  0x4e   : > { %p810_p3 = pneg %p1223_p4  ;;  %p814_p8 = scmp.lt.u32.totalorder %s1219_s6, %s1397_s1 }
  0x4f   : > { %p815_p5 = scmp.lt.u32.totalorder %s813_s23, %s808_s7  ;;  %p817_p12 = scmp.lt.u32.totalorder %s808_s7, %s1219_s6 }
  0x50   : > { %p811_p2 = pnand %p810_p3, %p809_p6 }
  0x51   : > { %p816_p10 = por %p815_p5, %p814_p8 }
  0x52   : > { %p812_p7 = pneg %p811_p2 }
  0x53   : > { %p818_p1 = por %p817_p12, %p816_p10 }
  0x55   : > { %p819_p11 = pnand %p818_p1, %p812_p7 }
  0x57   : > { %822 = shalt.err (!%p819_p11)
}
  0x58   : > { %s823_s26 = scalar_lea.vmem %s1227_s30, 2048  ;;  %s993_s9 = smov [#allocation6]  }
  0x59   : > { %p824_p9 = scmp.ne.s32.totalorder %s1227_s30, %s823_s26  ;;  %s828_s28 = sshll.u32 %s993_s9, 4  ;;  %s829_s28 = int_to_ptr.vmem [resolvable:$false] %s828_s28 }
  0x5a   : > { %s830_s4 = scalar_lea.vmem %s829_s28, 4096  ;;  %p831_p0 = scmp.lt.s32.totalorder %s1227_s30, %s829_s28 }
  0x5b   : > { %p826_p6 = pnand %p824_p9, %p810_p3  ;;  %p832_p8 = scmp.lt.s32.totalorder %s830_s4, %s823_s26 }
  0x5d   : > { %p827_p2 = pneg %p826_p6  ;;  %p833_p5 = por %p832_p8, %p831_p0 }
  0x5f   : > { %p834_p10 = pnand %p833_p5, %p827_p2 }
  0x61   : > { %837 = shalt.err (!%p834_p10)
}
  0x62   : > { %s1431_s11 = smov 8   ;;  %s1432_s7 = smov 128  }
  0x63   : > { %654 = dma.hbm_to_vmem [thread:$0]  (!%p1223_p4), %s1219_s6, 2048, %s1227_s30, %s1229_s2, %s1432_s7, %s1432_s7, %s1431_s11  }
  0x64   : > { %191 = sbr.rel (%p1192_p13) target bundleno = 409 (0x199), region = 28  ;;  %s193_s24 = sand.u32 (!%p1192_p13), 1, %s964_s16  }
  0x65   : > { %s522_s8 = sshll.u32 (!%p1192_p13), %s193_s24, 5  ;;  %s194_s23 = scalar_lea.sflag (!%p1192_p13), [#allocation4], %s193_s24 }
  0x66   : > { %s1263_s26 = scalar_lea.vmem (!%p1192_p13), [#allocation3], %s522_s8  ;;  %p1433_p0 = scmp.ne.s32.totalorder (!%p1192_p13), %s1418_s3, 0 }
  0x6b   : > { %923 = dma.done.wait (%p1433_p0), %s194_s23, 512  }
  0x6c   : > { %925 = vsyncadd (%p1433_p0), %s194_s23, 4294966784  ;;  %s202_s12 = sand.u32 1, %s952_s13   ;;  %p1434_p13 = scmp.ne.s32.totalorder %s1428_s27, 0 }
  0x6d   : > { %s523_s9 = sshll.u32 %s202_s12, 7  ;;  %s203_s6 = scalar_lea.sflag [#allocation7], %s202_s12 }
  0x6e   : > { %s1270_s30 = scalar_lea.vmem [#allocation6], %s523_s9 }
  0x6f   : > { %927 = dma.done.wait (%p1434_p13), %s203_s6, 2048  }
  0x70   : > { %929 = vsyncadd (%p1434_p13), %s203_s6, 4294965248  ;;  %s229_s29 = sand.u32 1, %s940_s10   ;;  %p235_p4 = scmp.eq.s32.totalorder %s972_s18, 0 }
  0x71   : > { %s524_s3 = sshll.u32 %s229_s29, 5  ;;  %v994_v0 = vmov (%p235_p4), 0.0  }
  0x72   : > { %s1280_s2 = scalar_lea.vmem [#allocation8], %s524_s3  ;;  %240 = sbr.rel (!%p235_p4) target bundleno = 121 (0x79), region = 40  ;;  %241 = vst [vmem:[#allocation2] sm:$0xff] (%p235_p4), %v994_v0  ;;  %242 = vst [vmem:[#allocation2 + $0x8] sm:$0xff] (%p235_p4), %v994_v0 }
  0x73   : > { %243 = vst [vmem:[#allocation2 + $0x10] sm:$0xff] (%p235_p4), %v994_v0  ;;  %244 = vst [vmem:[#allocation2 + $0x18] sm:$0xff] (%p235_p4), %v994_v0 }
  0x79 PF: > { %v253_v1 = vld [vmem:[%s1270_s30] sm:$0xff]  ;;  %v254_v2 = vld [vmem:[%s1270_s30 + $0x8] sm:$0xff]  ;;  %v255_v3 = vld [vmem:[%s1270_s30 + $0x10] sm:$0xff]  ;;  %p362_p3 = scmp.eq.s32.totalorder %s972_s18, 2 }
  0x7a   : > { %v594_v4 = vpack.c.bf16 %v254_v2, %v253_v1  ;;  %v256_v5 = vld [vmem:[%s1270_s30 + $0x18] sm:$0xff]  ;;  %v257_v7 = vld [vmem:[%s1270_s30 + $0x20] sm:$0xff]  ;;  %v258_v8 = vld [vmem:[%s1270_s30 + $0x28] sm:$0xff] }
  0x7b   : > { %v598_v6 = vpack.c.bf16 %v256_v5, %v255_v3  ;;  %v602_v9 = vpack.c.bf16 %v258_v8, %v257_v7  ;;  %v249_v10 = vld [vmem:[%s1263_s26] sm:$0xff]  ;;  %v251_v11 = vld [vmem:[%s1263_s26 + $0x10] sm:$0xff]  ;;  %v260_v13 = vld [vmem:[%s1270_s30 + $0x38] sm:$0xff] }
  0x7c   : > { %595 = vmatprep.subr.bf16.mxu0 %v594_v4  ;;  %626 = vmatprep.subr.bf16.mxu1 %v594_v4  ;;  %v259_v12 = vld [vmem:[%s1270_s30 + $0x30] sm:$0xff]  ;;  %v261_v15 = vld [vmem:[%s1270_s30 + $0x40] sm:$0xff]  ;;  %v262_v16 = vld [vmem:[%s1270_s30 + $0x48] sm:$0xff] }
  0x7d   : > { %597 = vmatpush3.bf16.msra.mxu0 %v594_v4  ;;  %634 = vmatpush3.bf16.msra.mxu1 %v594_v4  ;;  %v606_v14 = vpack.c.bf16 %v260_v13, %v259_v12  ;;  %v610_v17 = vpack.c.bf16 %v262_v16, %v261_v15  ;;  %v263_v18 = vld [vmem:[%s1270_s30 + $0x50] sm:$0xff]  ;;  %v264_v19 = vld [vmem:[%s1270_s30 + $0x58] sm:$0xff]  ;;  %v265_v21 = vld [vmem:[%s1270_s30 + $0x60] sm:$0xff] }
  0x7e   : > { %599 = vmatprep.subr.bf16.mxu0 %v598_v6  ;;  %627 = vmatprep.subr.bf16.mxu1 %v598_v6  ;;  %v614_v20 = vpack.c.bf16 %v264_v19, %v263_v18  ;;  %v266_v22 = vld [vmem:[%s1270_s30 + $0x68] sm:$0xff]  ;;  %v267_v24 = vld [vmem:[%s1270_s30 + $0x70] sm:$0xff]  ;;  %v268_v25 = vld [vmem:[%s1270_s30 + $0x78] sm:$0xff] }
  0x7f   : > { %588 = vmatprep.mubr.f32.mxu0 %v249_v10  ;;  %591 = vmatprep.mubr.f32.mxu1 %v251_v11  ;;  %v618_v23 = vpack.c.bf16 %v266_v22, %v265_v21  ;;  %v622_v26 = vpack.c.bf16 %v268_v25, %v267_v24  ;;  %v250_v27 = vld [vmem:[%s1263_s26 + $0x8] sm:$0xff]  ;;  %v252_v28 = vld [vmem:[%s1263_s26 + $0x18] sm:$0xff]  ;;  %v245_v31 = vld [vmem:[#allocation2] sm:$0xff] }
  0x80   : > { %v246_v29 = vld [vmem:[#allocation2 + $0x8] sm:$0xff]  ;;  %v248_v30 = vld [vmem:[#allocation2 + $0x18] sm:$0xff]  ;;  %v247_v32 = vld [vmem:[#allocation2 + $0x10] sm:$0xff] }
  0x81   : > { %601 = vmatpush3.bf16.msra.mxu0 %v598_v6  ;;  %635 = vmatpush3.bf16.msra.mxu1 %v598_v6 }
  0x82   : > { %603 = vmatprep.subr.bf16.mxu0 %v602_v9  ;;  %628 = vmatprep.subr.bf16.mxu1 %v602_v9 }
  0x85   : > { %605 = vmatpush3.bf16.msra.mxu0 %v602_v9  ;;  %636 = vmatpush3.bf16.msra.mxu1 %v602_v9 }
  0x86   : > { %607 = vmatprep.subr.bf16.mxu0 %v606_v14  ;;  %629 = vmatprep.subr.bf16.mxu1 %v606_v14 }
  0x89   : > { %609 = vmatpush3.bf16.msra.mxu0 %v606_v14  ;;  %637 = vmatpush3.bf16.msra.mxu1 %v606_v14 }
  0x8a   : > { %611 = vmatprep.subr.bf16.mxu0 %v610_v17  ;;  %630 = vmatprep.subr.bf16.mxu1 %v610_v17 }
  0x8d   : > { %613 = vmatpush3.bf16.msra.mxu0 %v610_v17  ;;  %638 = vmatpush3.bf16.msra.mxu1 %v610_v17 }
  0x8e   : > { %615 = vmatprep.subr.bf16.mxu0 %v614_v20  ;;  %631 = vmatprep.subr.bf16.mxu1 %v614_v20 }
  0x91   : > { %617 = vmatpush3.bf16.msra.mxu0 %v614_v20  ;;  %639 = vmatpush3.bf16.msra.mxu1 %v614_v20 }
  0x92   : > { %619 = vmatprep.subr.bf16.mxu0 %v618_v23  ;;  %632 = vmatprep.subr.bf16.mxu1 %v618_v23 }
  0x95   : > { %621 = vmatpush3.bf16.msra.mxu0 %v618_v23  ;;  %640 = vmatpush3.bf16.msra.mxu1 %v618_v23 }
  0x96   : > { %623 = vmatprep.subr.bf16.mxu0 %v622_v26  ;;  %633 = vmatprep.subr.bf16.mxu1 %v622_v26 }
  0x99   : > { %625 = vmatpush3.bf16.msra.mxu0 %v622_v26  ;;  %641 = vmatpush3.bf16.msra.mxu1 %v622_v26 }
  0x9c   : > { %589 = vmatmul.mubr.f32.vlgmr.msra.gmra.mrb[0].mxu0 %v250_v27  ;;  %592 = vmatmul.mubr.f32.vlgmr.msra.gmra.mrb[0].mxu1 %v252_v28 }
 0x16d   : > { %366 = sbr.rel (!%p362_p3) target bundleno = 382 (0x17e), region = 44 }
 0x16f   : > { %v590_v33 = vpop.f32.mrb[0].mxu0  ;;  %v593_v34 = vpop.f32.mrb[0].mxu1 }
 0x170   : > { %v355_v35 = vadd.f32 %v590_v33, %v246_v29  ;;  %v357_v36 = vadd.f32 %v593_v34, %v248_v30  ;;  %v335_v37 = vpop.f32.mrb[1].mxu0  ;;  %v345_v38 = vpop.f32.mrb[1].mxu1 }
 0x171   : > { %v354_v39 = vadd.f32 %v335_v37, %v245_v31  ;;  %v356_v40 = vadd.f32 %v345_v38, %v247_v32 }
 0x172   : > { %359 = vst [vmem:[#allocation2 + $0x8] sm:$0xff] %v355_v35  ;;  %361 = vst [vmem:[#allocation2 + $0x18] sm:$0xff] %v357_v36 }
 0x173   : > { %358 = vst [vmem:[#allocation2] sm:$0xff] %v354_v39  ;;  %360 = vst [vmem:[#allocation2 + $0x10] sm:$0xff] %v356_v40 }
 0x179   : > { %v368_v42 = vld [vmem:[#allocation2 + $0x8] sm:$0xff]  ;;  %v370_v47 = vld [vmem:[#allocation2 + $0x18] sm:$0xff] }
 0x17a   : > { %v367_v41 = vld [vmem:[#allocation2] sm:$0xff]  ;;  %v369_v43 = vld [vmem:[#allocation2 + $0x10] sm:$0xff]  ;;  %v372_v45 = vmax.f32 %v368_v42, 0.0  ;;  %v374_v48 = vmax.f32 %v370_v47, 0.0 }
 0x17b   : > { %v371_v44 = vmax.f32 %v367_v41, 0.0  ;;  %v373_v46 = vmax.f32 %v369_v43, 0.0 }
 0x17c   : > { %376 = vst [vmem:[%s1280_s2 + $0x8] sm:$0xff] %v372_v45  ;;  %378 = vst [vmem:[%s1280_s2 + $0x18] sm:$0xff] %v374_v48 }
 0x17d   : > { %375 = vst [vmem:[%s1280_s2] sm:$0xff] %v371_v44  ;;  %377 = vst [vmem:[%s1280_s2 + $0x10] sm:$0xff] %v373_v46 }
 0x17e PF: > { %s535_s18 = sshll.u32 %s976_s19, 9  ;;  %s1435_s4 = sld [smem:[#allocation18_spill]] }
 0x17f   : > { %s393_s7 = sshll.u32 %s1280_s2, 4  ;;  %s1320_s24 = scalar_lea.sflag [#allocation5], %s229_s29  ;;  %s1316_s7 = int_to_ptr.vmem [resolvable:$true] %s393_s7 }
 0x180   : > { %s838_s8 = scalar_lea.vmem %s1316_s7, 512  ;;  %p1436_p12 = scmp.ne.s32.totalorder %s1421_s15, 0 }
 0x181   : > { %p839_p7 = scmp.ne.s32.totalorder %s1316_s7, %s838_s8  ;;  %s995_s19 = smov [#allocation8]  }
 0x182   : > { %s842_s23 = sshll.u32 %s995_s19, 4  ;;  %s843_s23 = int_to_ptr.vmem [resolvable:$false] %s842_s23 }
 0x183   : > { %p840_p1 = pnand %p839_p7, %p1436_p12  ;;  %s844_s26 = scalar_lea.vmem %s843_s23, 1024 }
 0x184   : > { %s1313_s11 = scalar_lea.hbm %s1435_s4, %s535_s18  ;;  %p845_p9 = scmp.lt.s32.totalorder %s1316_s7, %s843_s23 }
 0x185   : > { %p841_p11 = pneg %p840_p1  ;;  %p846_p6 = scmp.lt.s32.totalorder %s844_s26, %s838_s8 }
 0x187   : > { %p847_p2 = por %p846_p6, %p845_p9 }
 0x189   : > { %p848_p8 = pnand %p847_p2, %p841_p11 }
 0x18b   : > { %851 = shalt.err (!%p848_p8)
}
 0x18c   : > { %s852_s12 = scalar_lea.hbm %s1313_s11, 512  ;;  %s856_s30 = scalar_lea.hbm %s1435_s4, 2048 }
 0x18d   : > { %p853_p5 = scmp.ne.s32.totalorder %s1313_s11, %s852_s12  ;;  %p857_p13 = scmp.lt.u32.totalorder %s1313_s11, %s1435_s4 }
 0x18e   : > { %p858_p4 = scmp.lt.u32.totalorder %s856_s30, %s852_s12  ;;  %p860_p7 = scmp.lt.u32.totalorder %s852_s12, %s1313_s11 }
 0x18f   : > { %p854_p10 = pnand %p853_p5, %p1436_p12 }
 0x190   : > { %p859_p3 = por %p858_p4, %p857_p13 }
 0x191   : > { %p855_p0 = pneg %p854_p10 }
 0x192   : > { %p861_p1 = por %p860_p7, %p859_p3 }
 0x194   : > { %p862_p11 = pnand %p861_p1, %p855_p0 }
 0x196   : > { %865 = shalt.err (!%p862_p11)
}
 0x197   : > { %s996_s2 = smov 128   ;;  %s997_s18 = smov 8  }
 0x198   : > { %646 = dma.vmem_to_hbm [thread:$0]  (%p1436_p12), %s1316_s7, 512, %s1313_s11, %s1320_s24, %s996_s2, %s996_s2, %s997_s18  }
 0x199 PF: > { %s1437_s27 = sld [smem:[#allocation12_spill]]  ;;  %p660_p9 = scmp.ge.s32.totalorder %s988_s22, 2 }
 0x19a   : > { %p1438_p6 = scmp.ne.s32.totalorder %s1422_s25, 0 }
 0x19c   : > { %p656_p2 = pnand %p660_p9, %p1438_p6 }
 0x19f   : > { %s408_s28 = sand.u32 1, %s1437_s27  }
 0x1a0   : > { %s409_s8 = scalar_lea.sflag [#allocation5], %s408_s28 }
 0x1a1   : > { %931 = dma.done.wait (!%p656_p2), %s409_s8, 512  }
 0x1a2   : > { %933 = vsyncadd (!%p656_p2), %s409_s8, 4294966784  ;;  %s21_s22 = sadd.s32 1, %s988_s22   ;;  %s1440_s15 = sld [smem:[#allocation13_spill]] }
 0x1a3   : > { %p1349_p8 = scmp.ge.s32.totalorder %s21_s22, 14   ;;  %s1441_s11 = sld [smem:[#allocation16_spill]] }
 0x1a4   : > { %s1442_s7 = sld [smem:[#allocation17_spill]]  ;;  %s1443_s25 = sld [smem:[#allocation14_spill]] }
 0x1a5   : > { %s1444_s24 = sld [smem:[#allocation15_spill]]  ;;  %s1446_s9 = smov %s940_s10 }
 0x1a6   : > { %s1448_s12 = smov %s952_s13  ;;  %s1449_s13 = smov %s956_s14 }
 0x1a7   : > { %s1450_s14 = smov %s1202_s5  ;;  %s1454_s18 = smov %s980_s20 }
 0x1a8   : > { %s1447_s10 = smov %s1440_s15  ;;  %s1451_s15 = smov %s964_s16 }
 0x1a9   : > { %s1452_s16 = smov %s968_s17  ;;  %s1455_s19 = smov %s984_s21 }
 0x1aa   : > { %s1453_s17 = smov %s1442_s7  ;;  %s1456_s20 = smov %s1443_s25 }
 0x1ab   : > { %s1457_s21 = smov %s1444_s24  ;;  %20 = sbr.rel (!%p1349_p8) target bundleno = 14 (0xe), region = 94 }
 0x1b2   :  { %414 = vsyncpa [#allocation4], 1 }
 0x1b3   :  { %416 = vsyncpa [#allocation4 + $0x1], 1 }
 0x1b4   :  { %417 = vsyncpa [#allocation7], 1 }
 0x1b5   :  { %419 = vsyncpa [#allocation7 + $0x1], 1 }
 0x1b6   :  { %420 = vsyncpa [#allocation5], 1 }
 0x1b7   :  { %422 = vsyncpa [#allocation5 + $0x1], 1 }

</bundles_post_ra>
